<compile_context>
chip_gen: v7x
topology: tpu7x:2x2x1
jax: 0.10.0
libtpu: 0.0.40
codegen_flags: <defaults>
</compile_context>

<pallas_src>
import jax
import jax.numpy as jnp
from jax.experimental import pallas as pl
from jax.experimental.pallas import tpu as pltpu

LN_EPS = 1e-5            # nn.LayerNorm default eps
RMS_EPS = 1e-5           # RMSNorm eps from the module
LANE = 128
SUBLANE = 8
MAX_CLASS_TILE = 512     # class-dim tile bound (keeps resident VMEM bounded on v7x)


def _round_up(n, m):
    return ((n + m - 1) // m) * m


def _make_spmamba_kernel(n_layer: int):
    def kernel(x_ref, lng_ref, lnb_ref, rmsw_ref, rmsnw_ref, w_ref, b_ref, out_ref):
        # x_ref: (TB, D) -- one sublane-dense tile of last-token activations.
        x = x_ref[...].astype(jnp.float32)

        # ---- nn.LayerNorm(in_dim) ----
        mean = jnp.mean(x, axis=-1, keepdims=True)
        var = jnp.mean((x - mean) ** 2, axis=-1, keepdims=True)
        x = (x - mean) * jax.lax.rsqrt(var + LN_EPS) * lng_ref[...] + lnb_ref[...]

        # ---- n_layer x ResidualBlock(d_model, d_state) ----
        # Unrolled Python loop is fine (and better for LLO scheduling) at small
        # n_layer; switch to lax.fori_loop with a dynamic rmsw_ref[l] row load if
        # n_layer grows beyond a handful (bounds live ranges / VMEM).
        for l in range(n_layer):
            w = rmsw_ref[l]                                    # (D,)
            x1 = x * jax.lax.rsqrt(jnp.mean(x * x, axis=-1, keepdims=True) + RMS_EPS) * w
            # TODO(synk): Mamba2Block(d_model, d_state) has no definition in the
            # provided source; the mixer is treated as identity here. A real mixer
            # couples tokens and would invalidate the last-token-only feed and this
            # identity -- both must be revisited for any real-model use.
            x2 = x1
            x = x2 + x1                                        # output = x2 + x1 (per module)

        # ---- final RMSNorm(d_model) ----
        x = x * jax.lax.rsqrt(jnp.mean(x * x, axis=-1, keepdims=True) + RMS_EPS) * rmsnw_ref[...]

        # ---- out_proj: (TB, D) x (D, TN) bf16 MXU matmul, f32 accumulate ----
        logits = jnp.dot(x.astype(jnp.bfloat16), w_ref[...],
                         preferred_element_type=jnp.float32) + b_ref[...]
        out_ref[...] = logits.astype(out_ref.dtype)            # lane-dense (TB, TN) store

    return kernel


def prepare_spmamba_params(params):
    """One-time parameter prep (hoisted out of the per-call path): pad the
    classifier head to lane-dense tiles and cast the matmul weight to bf16."""
    d_model, n_class = params["out_w"].shape
    n_pad = _round_up(n_class, LANE)
    if n_pad > MAX_CLASS_TILE:
        n_pad = _round_up(n_pad, MAX_CLASS_TILE)
        tn = MAX_CLASS_TILE
    else:
        tn = n_pad
    prepared = dict(params)
    prepared["out_w"] = jnp.pad(
        params["out_w"], ((0, 0), (0, n_pad - n_class))).astype(jnp.bfloat16)   # (D, n_pad) bf16
    prepared["out_b"] = jnp.pad(
        params["out_b"], ((0, 0), (0, n_pad - n_class)))                         # (1, n_pad) f32
    prepared["n_class"] = n_class
    prepared["class_tile"] = tn
    return prepared


def _batch_tiling(B):
    """Pick (TB, n_steps): single step on single-TC chips (v5e/v6e); split real
    rows across the 2 v7x TensorCores only when both halves carry real data."""
    try:
        kind = jax.devices()[0].device_kind.lower()
    except Exception:
        kind = ""
    two_tc = ("v7" in kind) or ("7x" in kind)          # v7x: 2 TensorCores / chip
    if two_tc and B >= 2 * SUBLANE:
        tb = min(256, _round_up(-(-B // 2), SUBLANE))  # bigger M tile fills the 256^2 MXU
    else:
        tb = min(LANE, _round_up(B, SUBLANE))          # no padding-only grid steps
    n_steps = -(-B // tb)
    return tb, n_steps


def spmamba_forward(x, edge_index, prepared, mask1=None, mask2=None):
    """x: (B, S, in_dim) float32; returns (B, n_class) float32."""
    # TODO(synk): DGSL(in_dim, hid_dim, d_model, q_head, kv_head) has no definition
    # in the provided source; it (and edge_index / mask1 / mask2) is treated as
    # identity, so in_dim == d_model is assumed (required anyway by nn.LayerNorm(in_dim)
    # feeding the d_model Mamba blocks).
    del edge_index, mask1, mask2
    B, S, D = x.shape
    n_layer = prepared["rms_w"].shape[0]
    n_class = prepared["n_class"]
    out_w, out_b = prepared["out_w"], prepared["out_b"]
    n_pad = out_w.shape[1]
    TN = prepared["class_tile"]
    nc_steps = n_pad // TN

    # Identity mixer => every pre-head op is per-token; only the last token reaches
    # the classifier, so feed just x[:, -1, :] (S x less HBM traffic and norm work).
    x_last = x[:, -1, :]                                   # (B, D)

    TB, n_steps = _batch_tiling(B)
    B_pad = n_steps * TB
    if B_pad != B:
        x_last = jnp.pad(x_last, ((0, B_pad - B), (0, 0)))  # pad to sublane multiple only

    const = pl.Buffered(1)                                  # never changes across the grid
    w_mode = pl.Buffered(1) if nc_steps == 1 else None      # head constant iff one class tile

    kernel = _make_spmamba_kernel(n_layer)
    out = pl.pallas_call(
        kernel,
        out_shape=jax.ShapeDtypeStruct((B_pad, n_pad), jnp.float32),
        grid=(n_steps, nc_steps),
        in_specs=[
            pl.BlockSpec((TB, D), lambda i, j: (i, 0)),                             # activations
            pl.BlockSpec((1, D), lambda i, j: (0, 0), pipeline_mode=const),         # LN gamma
            pl.BlockSpec((1, D), lambda i, j: (0, 0), pipeline_mode=const),         # LN beta
            pl.BlockSpec((n_layer, D), lambda i, j: (0, 0), pipeline_mode=const),   # RMS weights
            pl.BlockSpec((1, D), lambda i, j: (0, 0), pipeline_mode=const),         # final RMS weight
            pl.BlockSpec((D, TN), lambda i, j: (0, j), pipeline_mode=w_mode),       # out_proj W (bf16)
            pl.BlockSpec((1, TN), lambda i, j: (0, j), pipeline_mode=w_mode),       # out_proj b
        ],
        out_specs=pl.BlockSpec((TB, TN), lambda i, j: (i, j)),
        compiler_params=pltpu.CompilerParams(
            dimension_semantics=("parallel", "parallel")),
    )(
        x_last,
        prepared["ln_g"], prepared["ln_b"],
        prepared["rms_w"], prepared["rmsn_w"],
        out_w, out_b,
    )
    return out[:B, :n_class]


if __name__ == "__main__":
    key = jax.random.PRNGKey(0)
    B, S = 2, 8
    in_dim = d_model = 32
    d_state = 16          # declared by the module; unused (Mamba2Block undefined, see TODO)
    hid_dim, q_head, kv_head = 64, 2, 1   # DGSL args; unused (DGSL undefined, see TODO)
    n_layer, n_class = 2, 4

    kx, kw, kb = jax.random.split(key, 3)
    x = jax.random.normal(kx, (B, S, in_dim), dtype=jnp.float32)
    edge_index = jnp.zeros((2, S), dtype=jnp.int32)  # placeholder graph edges

    # Parameters per __init__: LayerNorm (ones/zeros), RMSNorm weights (ones),
    # out_proj Linear (deterministic random).
    params = {
        "ln_g": jnp.ones((1, in_dim), jnp.float32),
        "ln_b": jnp.zeros((1, in_dim), jnp.float32),
        "rms_w": jnp.ones((n_layer, d_model), jnp.float32),
        "rmsn_w": jnp.ones((1, d_model), jnp.float32),
        "out_w": jax.random.normal(kw, (d_model, n_class), jnp.float32) / jnp.sqrt(d_model),
        "out_b": jax.random.normal(kb, (1, n_class), jnp.float32) * 0.01,
    }
    prepared = prepare_spmamba_params(params)   # one-time: pad + bf16-cast the head

    out = spmamba_forward(x, edge_index, prepared)
    out = jax.block_until_ready(out)

    # Pure-JAX f32 reference of the same (translatable) forward pass.
    def ref_forward(xv):
        mean = jnp.mean(xv, -1, keepdims=True)
        var = jnp.mean((xv - mean) ** 2, -1, keepdims=True)
        h = (xv - mean) * jax.lax.rsqrt(var + LN_EPS) * params["ln_g"][0] + params["ln_b"][0]
        for l in range(n_layer):
            h1 = h * jax.lax.rsqrt(jnp.mean(h * h, -1, keepdims=True) + RMS_EPS) * params["rms_w"][l]
            h = h1 + h1  # identity mixer + residual (output = x2 + x1)
        h = h * jax.lax.rsqrt(jnp.mean(h * h, -1, keepdims=True) + RMS_EPS) * params["rmsn_w"][0]
        return h[:, -1, :] @ params["out_w"] + params["out_b"][0]

    ref = ref_forward(x)
    assert out.shape == (B, n_class)
    # Tolerance loosened slightly vs pure-f32 because the out_proj matmul runs
    # with bf16 operands (f32 accumulation).
    assert jnp.allclose(out, ref, atol=2e-2, rtol=2e-2), (out, ref)
    print("KERNEL_OK")
</pallas_src>

<mosaic_0001>
module attributes {stable_mosaic.version = 11 : i64} {
  func.func @kernel(%arg0: i32, %arg1: i32, %arg2: memref<8x32xf32, #tpu.memory_space<vmem>>, %arg3: memref<1x32xf32, #tpu.memory_space<vmem>>, %arg4: memref<1x32xf32, #tpu.memory_space<vmem>>, %arg5: memref<2x32xf32, #tpu.memory_space<vmem>>, %arg6: memref<1x32xf32, #tpu.memory_space<vmem>>, %arg7: memref<32x128xbf16, #tpu.memory_space<vmem>>, %arg8: memref<1x128xf32, #tpu.memory_space<vmem>>, %arg9: memref<8x128xf32, #tpu.memory_space<vmem>>) attributes {dimension_semantics = [#tpu.dimension_semantics<parallel>, #tpu.dimension_semantics<parallel>], iteration_bounds = array<i64: 1, 1>, scalar_prefetch = 0 : i64, scratch_operands = 0 : i64, tpu.core_type = #tpu.core_type<tc>, window_params = [{transform_indices = @transform_0, window_bounds = array<i64: 8, 32>}, {pipeline_mode = #tpu.pipeline_mode<synchronous>, transform_indices = @transform_1, window_bounds = array<i64: 1, 32>}, {pipeline_mode = #tpu.pipeline_mode<synchronous>, transform_indices = @transform_2, window_bounds = array<i64: 1, 32>}, {pipeline_mode = #tpu.pipeline_mode<synchronous>, transform_indices = @transform_3, window_bounds = array<i64: 2, 32>}, {pipeline_mode = #tpu.pipeline_mode<synchronous>, transform_indices = @transform_4, window_bounds = array<i64: 1, 32>}, {pipeline_mode = #tpu.pipeline_mode<synchronous>, transform_indices = @transform_5, window_bounds = array<i64: 32, 128>}, {pipeline_mode = #tpu.pipeline_mode<synchronous>, transform_indices = @transform_6, window_bounds = array<i64: 1, 128>}, {transform_indices = @transform_7, window_bounds = array<i64: 8, 128>}]} {
    %c0 = arith.constant 0 : index
    %c0_0 = arith.constant 0 : index
    %0 = vector.load %arg2[%c0, %c0_0] : memref<8x32xf32, #tpu.memory_space<vmem>>, vector<8x32xf32>
    %cst = arith.constant dense<0.000000e+00> : vector<8xf32>
    %1 = vector.multi_reduction <add>, %0, %cst [1] : vector<8x32xf32> to vector<8xf32>
    %2 = vector.shape_cast %1 : vector<8xf32> to vector<8x1xf32>
    %cst_1 = arith.constant 3.200000e+01 : f32
    %3 = vector.broadcast %cst_1 : f32 to vector<8x1xf32>
    %4 = arith.divf %2, %3 : vector<8x1xf32>
    %5 = vector.broadcast %4 : vector<8x1xf32> to vector<8x32xf32>
    %6 = arith.subf %0, %5 : vector<8x32xf32>
    %7 = arith.mulf %6, %6 : vector<8x32xf32>
    %cst_2 = arith.constant dense<0.000000e+00> : vector<8xf32>
    %8 = vector.multi_reduction <add>, %7, %cst_2 [1] : vector<8x32xf32> to vector<8xf32>
    %9 = vector.shape_cast %8 : vector<8xf32> to vector<8x1xf32>
    %cst_3 = arith.constant 3.200000e+01 : f32
    %10 = vector.broadcast %cst_3 : f32 to vector<8x1xf32>
    %11 = arith.divf %9, %10 : vector<8x1xf32>
    %12 = vector.broadcast %4 : vector<8x1xf32> to vector<8x32xf32>
    %13 = arith.subf %0, %12 : vector<8x32xf32>
    %cst_4 = arith.constant 9.99999974E-6 : f32
    %14 = vector.broadcast %cst_4 : f32 to vector<8x1xf32>
    %15 = arith.addf %11, %14 : vector<8x1xf32>
    %16 = math.rsqrt %15 : vector<8x1xf32>
    %17 = vector.broadcast %16 : vector<8x1xf32> to vector<8x32xf32>
    %18 = arith.mulf %13, %17 : vector<8x32xf32>
    %c0_5 = arith.constant 0 : index
    %c0_6 = arith.constant 0 : index
    %19 = vector.load %arg3[%c0_5, %c0_6] : memref<1x32xf32, #tpu.memory_space<vmem>>, vector<1x32xf32>
    %20 = vector.broadcast %19 : vector<1x32xf32> to vector<8x32xf32>
    %21 = arith.mulf %18, %20 : vector<8x32xf32>
    %c0_7 = arith.constant 0 : index
    %c0_8 = arith.constant 0 : index
    %22 = vector.load %arg4[%c0_7, %c0_8] : memref<1x32xf32, #tpu.memory_space<vmem>>, vector<1x32xf32>
    %23 = vector.broadcast %22 : vector<1x32xf32> to vector<8x32xf32>
    %24 = arith.addf %21, %23 : vector<8x32xf32>
    %c0_9 = arith.constant 0 : index
    %c0_10 = arith.constant 0 : index
    %25 = vector.load %arg5[%c0_9, %c0_10] : memref<2x32xf32, #tpu.memory_space<vmem>>, vector<1x32xf32>
    %26 = vector.shape_cast %25 : vector<1x32xf32> to vector<32xf32>
    %27 = arith.mulf %24, %24 : vector<8x32xf32>
    %cst_11 = arith.constant dense<0.000000e+00> : vector<8xf32>
    %28 = vector.multi_reduction <add>, %27, %cst_11 [1] : vector<8x32xf32> to vector<8xf32>
    %29 = vector.shape_cast %28 : vector<8xf32> to vector<8x1xf32>
    %cst_12 = arith.constant 3.200000e+01 : f32
    %30 = vector.broadcast %cst_12 : f32 to vector<8x1xf32>
    %31 = arith.divf %29, %30 : vector<8x1xf32>
    %cst_13 = arith.constant 9.99999974E-6 : f32
    %32 = vector.broadcast %cst_13 : f32 to vector<8x1xf32>
    %33 = arith.addf %31, %32 : vector<8x1xf32>
    %34 = math.rsqrt %33 : vector<8x1xf32>
    %35 = vector.broadcast %34 : vector<8x1xf32> to vector<8x32xf32>
    %36 = arith.mulf %24, %35 : vector<8x32xf32>
    %37 = vector.shape_cast %26 : vector<32xf32> to vector<1x32xf32>
    %38 = vector.broadcast %37 : vector<1x32xf32> to vector<8x32xf32>
    %39 = arith.mulf %36, %38 : vector<8x32xf32>
    %40 = arith.addf %39, %39 : vector<8x32xf32>
    %c1 = arith.constant 1 : index
    %c0_14 = arith.constant 0 : index
    %41 = vector.load %arg5[%c1, %c0_14] : memref<2x32xf32, #tpu.memory_space<vmem>>, vector<1x32xf32>
    %42 = vector.shape_cast %41 : vector<1x32xf32> to vector<32xf32>
    %43 = arith.mulf %40, %40 : vector<8x32xf32>
    %cst_15 = arith.constant dense<0.000000e+00> : vector<8xf32>
    %44 = vector.multi_reduction <add>, %43, %cst_15 [1] : vector<8x32xf32> to vector<8xf32>
    %45 = vector.shape_cast %44 : vector<8xf32> to vector<8x1xf32>
    %cst_16 = arith.constant 3.200000e+01 : f32
    %46 = vector.broadcast %cst_16 : f32 to vector<8x1xf32>
    %47 = arith.divf %45, %46 : vector<8x1xf32>
    %cst_17 = arith.constant 9.99999974E-6 : f32
    %48 = vector.broadcast %cst_17 : f32 to vector<8x1xf32>
    %49 = arith.addf %47, %48 : vector<8x1xf32>
    %50 = math.rsqrt %49 : vector<8x1xf32>
    %51 = vector.broadcast %50 : vector<8x1xf32> to vector<8x32xf32>
    %52 = arith.mulf %40, %51 : vector<8x32xf32>
    %53 = vector.shape_cast %42 : vector<32xf32> to vector<1x32xf32>
    %54 = vector.broadcast %53 : vector<1x32xf32> to vector<8x32xf32>
    %55 = arith.mulf %52, %54 : vector<8x32xf32>
    %56 = arith.addf %55, %55 : vector<8x32xf32>
    %57 = arith.mulf %56, %56 : vector<8x32xf32>
    %cst_18 = arith.constant dense<0.000000e+00> : vector<8xf32>
    %58 = vector.multi_reduction <add>, %57, %cst_18 [1] : vector<8x32xf32> to vector<8xf32>
    %59 = vector.shape_cast %58 : vector<8xf32> to vector<8x1xf32>
    %cst_19 = arith.constant 3.200000e+01 : f32
    %60 = vector.broadcast %cst_19 : f32 to vector<8x1xf32>
    %61 = arith.divf %59, %60 : vector<8x1xf32>
    %cst_20 = arith.constant 9.99999974E-6 : f32
    %62 = vector.broadcast %cst_20 : f32 to vector<8x1xf32>
    %63 = arith.addf %61, %62 : vector<8x1xf32>
    %64 = math.rsqrt %63 : vector<8x1xf32>
    %65 = vector.broadcast %64 : vector<8x1xf32> to vector<8x32xf32>
    %66 = arith.mulf %56, %65 : vector<8x32xf32>
    %c0_21 = arith.constant 0 : index
    %c0_22 = arith.constant 0 : index
    %67 = vector.load %arg6[%c0_21, %c0_22] : memref<1x32xf32, #tpu.memory_space<vmem>>, vector<1x32xf32>
    %68 = vector.broadcast %67 : vector<1x32xf32> to vector<8x32xf32>
    %69 = arith.mulf %66, %68 : vector<8x32xf32>
    %70 = arith.truncf %69 : vector<8x32xf32> to vector<8x32xbf16>
    %c0_23 = arith.constant 0 : index
    %c0_24 = arith.constant 0 : index
    %71 = vector.load %arg7[%c0_23, %c0_24] : memref<32x128xbf16, #tpu.memory_space<vmem>>, vector<32x128xbf16>
    %cst_25 = arith.constant dense<0.000000e+00> : vector<8x128xf32>
    %72 = tpu.matmul %70, %71, %cst_25 {dimension_numbers = #tpu.dot_dimension_numbers<[1], [0], [0], [1], [0, 0, 1, 1], [], []>} : vector<8x32xbf16>, vector<32x128xbf16>, vector<8x128xf32> -> vector<8x128xf32>
    %c0_26 = arith.constant 0 : index
    %c0_27 = arith.constant 0 : index
    %73 = vector.load %arg8[%c0_26, %c0_27] : memref<1x128xf32, #tpu.memory_space<vmem>>, vector<1x128xf32>
    %74 = vector.broadcast %73 : vector<1x128xf32> to vector<8x128xf32>
    %75 = arith.addf %72, %74 : vector<8x128xf32>
    %c0_28 = arith.constant 0 : index
    %c0_29 = arith.constant 0 : index
    %76 = vector.load %arg9[%c0_28, %c0_29] : memref<8x128xf32, #tpu.memory_space<vmem>>, vector<8x128xf32>
    tpu.vector_store %arg9[%c0_28, %c0_29], %75 {strides = array<i32>} : memref<8x128xf32, #tpu.memory_space<vmem>>, vector<8x128xf32>,
    return
  }
  func.func @transform_0(%arg0: i32, %arg1: i32) -> (i32, i32) {
    %c0_i32 = arith.constant 0 : i32
    %c0_i32_0 = arith.constant 0 : i32
    return %arg0, %c0_i32 : i32, i32
  }
  func.func @transform_1(%arg0: i32, %arg1: i32) -> (i32, i32) {
    %c0_i32 = arith.constant 0 : i32
    %c0_i32_0 = arith.constant 0 : i32
    %c0_i32_1 = arith.constant 0 : i32
    return %c0_i32, %c0_i32_0 : i32, i32
  }
  func.func @transform_2(%arg0: i32, %arg1: i32) -> (i32, i32) {
    %c0_i32 = arith.constant 0 : i32
    %c0_i32_0 = arith.constant 0 : i32
    %c0_i32_1 = arith.constant 0 : i32
    return %c0_i32, %c0_i32_0 : i32, i32
  }
  func.func @transform_3(%arg0: i32, %arg1: i32) -> (i32, i32) {
    %c0_i32 = arith.constant 0 : i32
    %c0_i32_0 = arith.constant 0 : i32
    %c0_i32_1 = arith.constant 0 : i32
    return %c0_i32, %c0_i32_0 : i32, i32
  }
  func.func @transform_4(%arg0: i32, %arg1: i32) -> (i32, i32) {
    %c0_i32 = arith.constant 0 : i32
    %c0_i32_0 = arith.constant 0 : i32
    %c0_i32_1 = arith.constant 0 : i32
    return %c0_i32, %c0_i32_0 : i32, i32
  }
  func.func @transform_5(%arg0: i32, %arg1: i32) -> (i32, i32) {
    %c0_i32 = arith.constant 0 : i32
    %c0_i32_0 = arith.constant 0 : i32
    return %c0_i32, %arg1 : i32, i32
  }
  func.func @transform_6(%arg0: i32, %arg1: i32) -> (i32, i32) {
    %c0_i32 = arith.constant 0 : i32
    %c0_i32_0 = arith.constant 0 : i32
    return %c0_i32, %arg1 : i32, i32
  }
  func.func @transform_7(%arg0: i32, %arg1: i32) -> (i32, i32) {
    %c0_i32 = arith.constant 0 : i32
    return %arg0, %arg1 : i32, i32
  }
}

</mosaic_0001>

<bundles_post_ra>
// kernel: tpu_custom_call.1
= control target key start
LH: loop header
LB: loop body
LE: loop exit
PB: predicated region body
PF: predicated region fallthrough
CT: control target
= control target key end

     0   :  { %12 = vsyncpa [#allocation3], 0  ;;  %s521_s0 = inlined_call_operand.hbm [shape: f32[8,32], index: 0, kind: input, shape index: {}]   ;;  %s522_s1 = inlined_call_operand.hbm [shape: f32[1,32], index: 1, kind: input, shape index: {}]   ;;  %s523_s2 = inlined_call_operand.hbm [shape: f32[1,32], index: 2, kind: input, shape index: {}]   ;;  %s524_s3 = inlined_call_operand.vmem [shape: f32[2,32], index: 3, kind: input, shape index: {}]   ;;  %s525_s4 = inlined_call_operand.hbm [shape: f32[1,32], index: 4, kind: input, shape index: {}]   ;;  %s526_s5 = inlined_call_operand.vmem [shape: bf16[32,128], index: 5, kind: input, shape index: {}]   ;;  %s527_s6 = inlined_call_operand.vmem [shape: f32[1,128], index: 6, kind: input, shape index: {}]   ;;  %s528_s7 = inlined_call_operand.hbm [shape: f32[8,128], index: 7, kind: output, shape index: {}]  }
   0x1   :  { %13 = vsyncpa [#allocation6], 0 }
   0x2   :  { %14 = vsyncpa [#allocation9], 0 }
   0x3   :  { %15 = vsyncpa [#allocation4], 0  ;;  %s393_s24 = smov [#allocation5]   ;;  %s394_s26 = smov [#allocation2]  }
   0x4   :  { %s32_s25 = sshll.u32 %s393_s24, 4  ;;  %s22_s27 = sshll.u32 %s394_s26, 4  ;;  %s33_s25 = int_to_ptr.vmem [resolvable:$true] %s32_s25  ;;  %s23_s27 = int_to_ptr.vmem [resolvable:$true] %s22_s27 }
   0x5   :  { %s275_s30 = scalar_lea.hbm %s522_s1, 16 }
   0x6   :  { %p276_p0 = scmp.ne.s32.totalorder %s522_s1, %s275_s30  ;;  %p279_p1 = scmp.lt.u32.totalorder %s275_s30, %s522_s1 }
   0x8   :  { %p281_p2 = pnand %p279_p1, %p276_p0 }
   0xa   :  { %284 = shalt.err (!%p281_p2)
}
   0xb   :  { %s285_s12 = scalar_lea.vmem %s33_s25, 16  ;;  %s289_s13 = scalar_lea.vmem %s33_s25, 32 }
   0xc   :  { %p286_p3 = scmp.ne.s32.totalorder %s33_s25, %s285_s12  ;;  %p290_p4 = scmp.lt.s32.totalorder %s33_s25, %s33_s25 }
   0xd   :  { %p291_p5 = scmp.lt.s32.totalorder %s289_s13, %s285_s12 }
   0xf   :  { %p292_p6 = por %p291_p5, %p290_p4 }
  0x11   :  { %p293_p7 = pnand %p292_p6, %p286_p3 }
  0x13   :  { %296 = shalt.err (!%p293_p7)
}
  0x14   :  { %35 = dma.hbm_to_vmem [thread:$0]  %s522_s1, 16, %s33_s25, [#allocation6]  }
  0x15   :  { %s297_s18 = scalar_lea.hbm %s521_s0, 128 }
  0x16   :  { %p298_p8 = scmp.ne.s32.totalorder %s521_s0, %s297_s18  ;;  %p301_p9 = scmp.lt.u32.totalorder %s297_s18, %s521_s0 }
  0x18   :  { %p303_p10 = pnand %p301_p9, %p298_p8 }
  0x1a   :  { %306 = shalt.err (!%p303_p10)
}
  0x1b   :  { %s307_s23 = scalar_lea.vmem %s23_s27, 128  ;;  %p312_p12 = scmp.lt.s32.totalorder %s23_s27, %s23_s27 }
  0x1c   :  { %p308_p11 = scmp.ne.s32.totalorder %s23_s27, %s307_s23  ;;  %p313_p13 = scmp.lt.s32.totalorder %s307_s23, %s307_s23 }
  0x1e   :  { %p314_p0 = por %p313_p13, %p312_p12 }
  0x20   :  { %p315_p1 = pnand %p314_p0, %p308_p11 }
  0x22   :  { %318 = shalt.err (!%p315_p1)
}
  0x23   :  { %25 = dma.hbm_to_vmem [thread:$0]  %s521_s0, 128, %s23_s27, [#allocation3]  }
  0x24   :  { %s395_s25 = smov [#allocation7]   ;;  %s396_s28 = smov [#allocation8]  }
  0x25   :  { %s42_s26 = sshll.u32 %s395_s25, 4  ;;  %s54_s29 = sshll.u32 %s396_s28, 4  ;;  %s43_s26 = int_to_ptr.vmem [resolvable:$true] %s42_s26  ;;  %s55_s29 = int_to_ptr.vmem [resolvable:$true] %s54_s29 }
  0x26   :  { %s319_s9 = scalar_lea.hbm %s523_s2, 16 }
  0x27   :  { %p320_p2 = scmp.ne.s32.totalorder %s523_s2, %s319_s9  ;;  %p323_p3 = scmp.lt.u32.totalorder %s319_s9, %s523_s2 }
  0x29   :  { %p325_p4 = pnand %p323_p3, %p320_p2 }
  0x2b   :  { %328 = shalt.err (!%p325_p4)
}
  0x2c   :  { %s329_s0 = scalar_lea.vmem %s43_s26, 16  ;;  %s333_s27 = scalar_lea.vmem %s43_s26, 32 }
  0x2d   :  { %p330_p5 = scmp.ne.s32.totalorder %s43_s26, %s329_s0  ;;  %p334_p6 = scmp.lt.s32.totalorder %s43_s26, %s43_s26 }
  0x2e   :  { %p335_p7 = scmp.lt.s32.totalorder %s333_s27, %s329_s0 }
  0x30   :  { %p336_p8 = por %p335_p7, %p334_p6 }
  0x32   :  { %p337_p9 = pnand %p336_p8, %p330_p5 }
  0x34   :  { %340 = shalt.err (!%p337_p9)
}
  0x35   :  { %45 = dma.hbm_to_vmem [thread:$0]  %s523_s2, 16, %s43_s26, [#allocation6]  }
  0x36   :  { %s341_s18 = scalar_lea.hbm %s525_s4, 16 }
  0x37   :  { %p342_p10 = scmp.ne.s32.totalorder %s525_s4, %s341_s18  ;;  %p345_p11 = scmp.lt.u32.totalorder %s341_s18, %s525_s4 }
  0x39   :  { %p347_p12 = pnand %p345_p11, %p342_p10 }
  0x3b   :  { %350 = shalt.err (!%p347_p12)
}
  0x3c   :  { %s351_s23 = scalar_lea.vmem %s55_s29, 16  ;;  %s355_s1 = scalar_lea.vmem %s55_s29, 32 }
  0x3d   :  { %p352_p13 = scmp.ne.s32.totalorder %s55_s29, %s351_s23  ;;  %p356_p0 = scmp.lt.s32.totalorder %s55_s29, %s55_s29 }
  0x3e   :  { %p357_p1 = scmp.lt.s32.totalorder %s355_s1, %s351_s23 }
  0x40   :  { %p358_p2 = por %p357_p1, %p356_p0 }
  0x42   :  { %p359_p3 = pnand %p358_p2, %p352_p13 }
  0x44   :  { %362 = shalt.err (!%p359_p3)
}
  0x45   :  { %57 = dma.hbm_to_vmem [thread:$0]  %s525_s4, 16, %s55_s29, [#allocation9]  }
  0x46   :  { %385 = dma.done.wait [#allocation3], 128  }
  0x47   :  { %386 = vsyncadd [#allocation3], 4294967168 }
  0x48   :  { %387 = dma.done.wait [#allocation6], 32  }
  0x49   :  { %388 = vsyncadd [#allocation6], 4294967264 }
  0x4a   :  { %389 = dma.done.wait [#allocation9], 16  }
  0x4b   :  { %390 = vsyncadd [#allocation9], 4294967280  ;;  %vm76_vm0 = vcmask 261120   ;;  %v75_v0 = vld [vmem:[#allocation2] sm:$0xff]  ;;  %v238_v11 = vld [vmem:[#allocation5] ss:$0 sm:$0xff] }
  0x4c   :  { %v77_v1 = vsel %vm76_vm0, %v75_v0, 0.0  ;;  %v239_v13 = vld [vmem:[#allocation7] ss:$0 sm:$0xff]  ;;  %v240_v22 = vld [vmem:[%s524_s3] ss:$0 sm:$0xff]  ;;  %v397_v39 = vmov 0.0  }
  0x4d   :  { %78 = vadd.xlane.f32.xlu0 %v77_v1  ;;  %v241_v32 = vld [vmem:[%s524_s3 + $0x1] ss:$0 sm:$0xff]  ;;  %250 = vmatprep.subr.bf16.mxu0 %v397_v39  ;;  %vm398_vm1 = vmmov 0   ;;  %v266_v40 = vld [vmem:[%s526_s5 + $0x8] sm:$0xff]   ;;  %v242_v45 = vld [vmem:[#allocation8] ss:$0 sm:$0xff] }
  0x4e   :  { %v265_v38 = vld [vmem:[%s526_s5] sm:$0xff]   ;;  %254 = vmatprep.mubr.msk.bf16.mxu0 %vm398_vm1, %v397_v39  ;;  %s399_s11 = smov [#allocation10]  }
  0x4f   :  { %251 = vmatpush3.bf16.msra.mxu0 %v265_v38  ;;  %v243_v49 = vld [vmem:[%s527_s6] ss:$0 sm:$0xff]  ;;  %s227_s12 = sshll.u32 %s399_s11, 4  ;;  %s228_s12 = int_to_ptr.vmem [resolvable:$true] %s227_s12 }
  0x50   :  { %252 = vmatprep.subr.bf16.mxu0 %v397_v39  ;;  %s363_s5 = scalar_lea.vmem %s228_s12, 128  ;;  %p368_p5 = scmp.lt.s32.totalorder %s228_s12, %s228_s12 }
  0x51   :  { %p364_p4 = scmp.ne.s32.totalorder %s228_s12, %s363_s5  ;;  %p369_p6 = scmp.lt.s32.totalorder %s363_s5, %s363_s5 }
  0x53   :  { %253 = vmatpush3.bf16.msra.mxu0 %v266_v40  ;;  %p370_p7 = por %p369_p6, %p368_p5 }
  0x55   :  { %p371_p8 = pnand %p370_p7, %p364_p4 }
  0xda   :  { %v79_v2 = vpop.xlane.xlu0 %78 }
  0xdb   :  { %v81_v3 = vmul.f32 0.03125, %v79_v2 }
  0xdd   :  { %v82_v4 = vsub.f32 %v75_v0, %v81_v3 }
  0xdf   :  { %v83_v5 = vmul.f32 %v82_v4, %v82_v4 }
  0xe1   :  { %v84_v6 = vsel %vm76_vm0, %v83_v5, 0.0 }
  0xe2   :  { %85 = vadd.xlane.f32.xlu0 %v84_v6 }
 0x16f   :  { %v86_v7 = vpop.xlane.xlu0 %85 }
 0x170   :  { %v87_v8 = vmul.f32 0.03125, %v86_v7 }
 0x172   :  { %v88_v9 = vadd.f32 1e-05, %v87_v8 }
 0x174   :  { %267 = vrsqrt.f32 %v88_v9 }
 0x17e   :  { %v268_v10 = vpop.eup %267 }
 0x17f   :  { %v90_v12 = vmul.f32 %v268_v10, %v82_v4 }
 0x181   :  { %v98_v14 = vmul.f32 %v238_v11, %v90_v12 }
 0x183   :  { %v106_v15 = vadd.f32 %v239_v13, %v98_v14 }
 0x185   :  { %v108_v16 = vmul.f32 %v106_v15, %v106_v15 }
 0x187   :  { %v109_v17 = vsel %vm76_vm0, %v108_v16, 0.0 }
 0x188   :  { %110 = vadd.xlane.f32.xlu1 %v109_v17 }
 0x215   :  { %v111_v18 = vpop.xlane.xlu1 %110 }
 0x216   :  { %v112_v19 = vmul.f32 0.03125, %v111_v18 }
 0x218   :  { %v113_v20 = vadd.f32 1e-05, %v112_v19 }
 0x21a   :  { %269 = vrsqrt.f32 %v113_v20 }
 0x224   :  { %v270_v21 = vpop.eup %269 }
 0x225   :  { %v115_v23 = vmul.f32 %v270_v21, %v106_v15 }
 0x227   :  { %v120_v24 = vmul.f32 %v240_v22, %v115_v23 }
 0x229   :  { %v121_v25 = vadd.f32 %v120_v24, %v120_v24 }
 0x22b   :  { %v123_v26 = vmul.f32 %v121_v25, %v121_v25 }
 0x22d   :  { %v124_v27 = vsel %vm76_vm0, %v123_v26, 0.0 }
 0x22e   :  { %125 = vadd.xlane.f32.xlu1 %v124_v27 }
 0x2bb   :  { %v126_v28 = vpop.xlane.xlu1 %125 }
 0x2bc   :  { %v127_v29 = vmul.f32 0.03125, %v126_v28 }
 0x2be   :  { %v128_v30 = vadd.f32 1e-05, %v127_v29 }
 0x2c0   :  { %271 = vrsqrt.f32 %v128_v30 }
 0x2ca   :  { %v272_v31 = vpop.eup %271 }
 0x2cb   :  { %v130_v33 = vmul.f32 %v272_v31, %v121_v25 }
 0x2cd   :  { %v135_v34 = vmul.f32 %v241_v32, %v130_v33 }
 0x2cf   :  { %v136_v35 = vadd.f32 %v135_v34, %v135_v34 }
 0x2d1   :  { %v137_v36 = vmul.f32 %v136_v35, %v136_v35 }
 0x2d3   :  { %v138_v37 = vsel %vm76_vm0, %v137_v36, 0.0 }
 0x2d4   :  { %139 = vadd.xlane.f32.xlu0 %v138_v37 }
 0x361   :  { %v140_v41 = vpop.xlane.xlu0 %139 }
 0x362   :  { %v141_v42 = vmul.f32 0.03125, %v140_v41 }
 0x364   :  { %v142_v43 = vadd.f32 1e-05, %v141_v42 }
 0x366   :  { %273 = vrsqrt.f32 %v142_v43 }
 0x370   :  { %v274_v44 = vpop.eup %273 }
 0x371   :  { %v144_v46 = vmul.f32 %v274_v44, %v136_v35 }
 0x373   :  { %v152_v47 = vmul.f32 %v242_v45, %v144_v46 }
 0x375   :  { %v153_v48 = vpack.c.bf16 %v152_v47, %v152_v47 }
 0x377   :  { %255 = vmatmul.mubr.msk.bf16.vlgmr.msra.gmra.mrb[0].mxu0 %vm76_vm0, %v153_v48 }
 0x44a   :  { %v214_v50 = vpop.f32.mrb[0].mxu0 }
 0x44b   :  { %v215_v51 = vadd.f32 %v243_v49, %v214_v50  ;;  %v256_v52 = vpop.f32.mrb[1].mxu0 }
 0x44c   :  { %v217_v53 = vpop.f32.mrb[2].mxu0 }
 0x44d   :  { %220 = vst [vmem:[#allocation10] sm:$0xff] %v215_v51  ;;  %v257_v54 = vpop.f32.mrb[3].mxu0 }
 0x44e   :  { %374 = shalt.err (!%p371_p8)
}
 0x44f   :  { %s375_s6 = scalar_lea.hbm %s528_s7, 128 }
 0x450   :  { %p376_p9 = scmp.ne.s32.totalorder %s528_s7, %s375_s6  ;;  %p379_p10 = scmp.lt.u32.totalorder %s375_s6, %s528_s7 }
 0x452   :  { %p381_p11 = pnand %p379_p10, %p376_p9 }
 0x454   :  { %384 = shalt.err (!%p381_p11)
}
 0x455   :  { %230 = dma.vmem_to_hbm [thread:$0]  %s228_s12, 128, %s528_s7, [#allocation4]  }
 0x456   :  { %391 = dma.done.wait [#allocation4], 128  }
 0x457   :  { %392 = vsyncadd [#allocation4], 4294967168 }
 0x458   :  { %234 = vsyncpa [#allocation3], 1 }
 0x459   :  { %235 = vsyncpa [#allocation6], 1 }
 0x45a   :  { %236 = vsyncpa [#allocation9], 1 }
 0x45b   :  { %237 = vsyncpa [#allocation4], 1 }

</bundles_post_ra>
